<compile_context>
chip_gen: v5e
topology: v5e:2x2
jax: 0.10.0
libtpu: 0.0.40
codegen_flags: <defaults>
</compile_context>

<pallas_src>
import jax
import jax.numpy as jnp
from jax.experimental import pallas as pl
from jax.experimental.pallas import tpu as pltpu


def actor_kernel(x_ref, w1_ref, b1_ref, a1_ref, w2_ref, b2_ref, a2_ref,
                 w3_ref, b3_ref, o_ref):
    # x: (obs, tb) -- batch on the lane axis.
    x = x_ref[...]

    # F.normalize(x, dim=features): x / max(||x||, 1e-12)
    #   == x * rsqrt(max(||x||^2, 1e-24)); reduction over the 4-row sublane axis.
    sumsq = jnp.sum(x * x, axis=0, keepdims=True)            # (1, tb)
    xn = x * jax.lax.rsqrt(jnp.maximum(sumsq, 1e-24))

    # PReLU slopes: scalar reads from SMEM.
    a1 = a1_ref[0, 0]
    a2 = a2_ref[0, 0]

    # Linear 1 + PReLU:  (hid, obs) @ (obs, tb) + (hid, 1)
    h1 = jnp.dot(w1_ref[...], xn, preferred_element_type=jnp.float32) + b1_ref[...]
    h1 = jnp.where(h1 >= 0, h1, a1 * h1)

    # Linear 2 + PReLU:  (hid, hid) @ (hid, tb) + (hid, 1)
    h2 = jnp.dot(w2_ref[...], h1, preferred_element_type=jnp.float32) + b2_ref[...]
    h2 = jnp.where(h2 >= 0, h2, a2 * h2)

    # Linear 3 (logits): (act, hid) @ (hid, tb) + (act, 1)
    out = jnp.dot(w3_ref[...], h2, preferred_element_type=jnp.float32) + b3_ref[...]
    o_ref[...] = out.astype(o_ref.dtype)


def _choose_batch_tiling(B):
    """Pick (tile_b, n_steps) for the lane (batch) axis.

    Two 128-aligned tiles when the batch splits cleanly (keeps both v7x
    TensorCores busy via "parallel"); otherwise one full-array tile (valid for
    any B, no padding, no extra HBM traffic).
    """
    if B >= 256 and B % 256 == 0:
        return B // 2, 2
    return B, 1


def actor_forward(x, params):
    """x: (B, obs) float32. params: PyTorch-oriented weights/biases + PReLU slopes."""
    B, obs = x.shape
    act = params["w3"].shape[0]

    # One cheap wrapper transpose so batch rides the lane axis inside the kernel.
    x_t = jnp.transpose(x)                                    # (obs, B)

    tb, n_steps = _choose_batch_tiling(B)
    grid = (n_steps,)

    in_specs = [
        pl.BlockSpec((obs, tb), lambda i: (0, i)),            # x tile (lane-dense)
        pl.BlockSpec(params["w1"].shape, lambda i: (0, 0)),   # w1 (VMEM-resident)
        pl.BlockSpec(params["b1"].shape, lambda i: (0, 0)),   # b1
        pl.BlockSpec(memory_space=pltpu.MemorySpace.SMEM),    # a1 scalar slope
        pl.BlockSpec(params["w2"].shape, lambda i: (0, 0)),   # w2
        pl.BlockSpec(params["b2"].shape, lambda i: (0, 0)),   # b2
        pl.BlockSpec(memory_space=pltpu.MemorySpace.SMEM),    # a2 scalar slope
        pl.BlockSpec(params["w3"].shape, lambda i: (0, 0)),   # w3
        pl.BlockSpec(params["b3"].shape, lambda i: (0, 0)),   # b3
    ]
    out_spec = pl.BlockSpec((act, tb), lambda i: (0, i))      # logits tile (lane-dense)

    out_t = pl.pallas_call(
        actor_kernel,
        out_shape=jax.ShapeDtypeStruct((act, B), jnp.float32),
        grid=grid,
        in_specs=in_specs,
        out_specs=out_spec,
        compiler_params=pltpu.CompilerParams(
            dimension_semantics=("parallel",)),
    )(x_t,
      params["w1"], params["b1"], params["a1"],
      params["w2"], params["b2"], params["a2"],
      params["w3"], params["b3"])

    return jnp.transpose(out_t)                               # (B, act)


def init_actor_params(key, obs_size, act_size, hidden_size):
    """Deterministic init mimicking torch.nn.Linear / PReLU defaults.

    Weights stay in PyTorch (out, in) orientation; biases are (out, 1).
    """
    def linear_init(k, fan_in, fan_out):
        kw, kb = jax.random.split(k)
        bound = 1.0 / jnp.sqrt(fan_in)
        w = jax.random.uniform(kw, (fan_out, fan_in), jnp.float32, -bound, bound)
        b = jax.random.uniform(kb, (fan_out, 1), jnp.float32, -bound, bound)
        return w, b

    k1, k2, k3 = jax.random.split(key, 3)
    w1, b1 = linear_init(k1, obs_size, hidden_size)
    w2, b2 = linear_init(k2, hidden_size, hidden_size)
    w3, b3 = linear_init(k3, hidden_size, act_size)
    a1 = jnp.full((1, 1), 0.25, jnp.float32)   # PReLU default slope
    a2 = jnp.full((1, 1), 0.25, jnp.float32)
    return {"w1": w1, "b1": b1, "a1": a1,
            "w2": w2, "b2": b2, "a2": a2,
            "w3": w3, "b3": b3}


def actor_forward_ref(x, p):
    """Pure-JAX reference (matches F.normalize + Linear/PReLU semantics)."""
    norm = jnp.sqrt(jnp.sum(x * x, axis=1, keepdims=True))
    xn = x / jnp.maximum(norm, 1e-12)
    h1 = xn @ p["w1"].T + p["b1"].T
    h1 = jnp.where(h1 >= 0, h1, p["a1"][0, 0] * h1)
    h2 = h1 @ p["w2"].T + p["b2"].T
    h2 = jnp.where(h2 >= 0, h2, p["a2"][0, 0] * h2)
    return h2 @ p["w3"].T + p["b3"].T


if __name__ == "__main__":
    key = jax.random.PRNGKey(0)
    k_x, k_x2, k_x3, k_p = jax.random.split(key, 4)

    # CartPole-ish sizes: obs=4, actions=2, hidden=32.
    OBS, ACT, HID = 4, 2, 32
    params = init_actor_params(k_p, OBS, ACT, HID)

    # Batched path: B % 256 == 0 -> two parallel 128-aligned lane tiles.
    B_big = 512
    x_big = jax.random.normal(k_x, (B_big, OBS), jnp.float32)
    out_big = jax.block_until_ready(actor_forward(x_big, params))
    ref_big = actor_forward_ref(x_big, params)
    assert out_big.shape == (B_big, ACT)
    assert jnp.allclose(out_big, ref_big, atol=1e-5, rtol=1e-5), "batched mismatch"

    # Ragged batch: single full-array tile, no padding, no 128-divisibility needed.
    B_mid = 200
    x_mid = jax.random.normal(k_x3, (B_mid, OBS), jnp.float32)
    out_mid = jax.block_until_ready(actor_forward(x_mid, params))
    ref_mid = actor_forward_ref(x_mid, params)
    assert out_mid.shape == (B_mid, ACT)
    assert jnp.allclose(out_mid, ref_mid, atol=1e-5, rtol=1e-5), "ragged mismatch"

    # Tiny per-step path: single tile (block == full array).
    B_small = 8
    x_small = jax.random.normal(k_x2, (B_small, OBS), jnp.float32)
    out_small = jax.block_until_ready(actor_forward(x_small, params))
    ref_small = actor_forward_ref(x_small, params)
    assert out_small.shape == (B_small, ACT)
    assert jnp.allclose(out_small, ref_small, atol=1e-5, rtol=1e-5), "small mismatch"

    print("KERNEL_OK")
</pallas_src>

<mosaic_0001>
module attributes {stable_mosaic.version = 11 : i64} {
  func.func @actor_kernel(%arg0: i32, %arg1: memref<4x256xf32, #tpu.memory_space<vmem>>, %arg2: memref<32x4xf32, #tpu.memory_space<vmem>>, %arg3: memref<32x1xf32, #tpu.memory_space<vmem>>, %arg4: memref<1x1xf32, #tpu.memory_space<smem>>, %arg5: memref<32x32xf32, #tpu.memory_space<vmem>>, %arg6: memref<32x1xf32, #tpu.memory_space<vmem>>, %arg7: memref<1x1xf32, #tpu.memory_space<smem>>, %arg8: memref<2x32xf32, #tpu.memory_space<vmem>>, %arg9: memref<2x1xf32, #tpu.memory_space<vmem>>, %arg10: memref<2x256xf32, #tpu.memory_space<vmem>>) attributes {dimension_semantics = [#tpu.dimension_semantics<parallel>], iteration_bounds = array<i64: 2>, scalar_prefetch = 0 : i64, scratch_operands = 0 : i64, tpu.core_type = #tpu.core_type<tc>, window_params = [{transform_indices = @transform_0, window_bounds = array<i64: 4, 256>}, {pipeline_mode = #tpu.pipeline_mode<synchronous>, transform_indices = @transform_1, window_bounds = array<i64: 32, 4>}, {pipeline_mode = #tpu.pipeline_mode<synchronous>, transform_indices = @transform_2, window_bounds = array<i64: 32, 1>}, {transform_indices = @transform_3, window_bounds = array<i64: 1, 1>}, {pipeline_mode = #tpu.pipeline_mode<synchronous>, transform_indices = @transform_4, window_bounds = array<i64: 32, 32>}, {pipeline_mode = #tpu.pipeline_mode<synchronous>, transform_indices = @transform_5, window_bounds = array<i64: 32, 1>}, {transform_indices = @transform_6, window_bounds = array<i64: 1, 1>}, {pipeline_mode = #tpu.pipeline_mode<synchronous>, transform_indices = @transform_7, window_bounds = array<i64: 2, 32>}, {pipeline_mode = #tpu.pipeline_mode<synchronous>, transform_indices = @transform_8, window_bounds = array<i64: 2, 1>}, {transform_indices = @transform_9, window_bounds = array<i64: 2, 256>}]} {
    %c0 = arith.constant 0 : index
    %c0_0 = arith.constant 0 : index
    %0 = vector.load %arg1[%c0, %c0_0] : memref<4x256xf32, #tpu.memory_space<vmem>>, vector<4x256xf32>
    %1 = arith.mulf %0, %0 : vector<4x256xf32>
    %cst = arith.constant dense<0.000000e+00> : vector<256xf32>
    %2 = vector.multi_reduction <add>, %1, %cst [0] : vector<4x256xf32> to vector<256xf32>
    %3 = vector.shape_cast %2 : vector<256xf32> to vector<1x256xf32>
    %cst_1 = arith.constant 1.000000e-24 : f32
    %4 = vector.broadcast %cst_1 : f32 to vector<1x256xf32>
    %5 = arith.maximumf %3, %4 : vector<1x256xf32>
    %6 = math.rsqrt %5 : vector<1x256xf32>
    %7 = vector.broadcast %6 : vector<1x256xf32> to vector<4x256xf32>
    %8 = arith.mulf %0, %7 : vector<4x256xf32>
    %c0_2 = arith.constant 0 : index
    %c0_3 = arith.constant 0 : index
    %9 = memref.load %arg4[%c0_2, %c0_3] : memref<1x1xf32, #tpu.memory_space<smem>>
    %c0_4 = arith.constant 0 : index
    %c0_5 = arith.constant 0 : index
    %10 = memref.load %arg7[%c0_4, %c0_5] : memref<1x1xf32, #tpu.memory_space<smem>>
    %c0_6 = arith.constant 0 : index
    %c0_7 = arith.constant 0 : index
    %11 = vector.load %arg2[%c0_6, %c0_7] : memref<32x4xf32, #tpu.memory_space<vmem>>, vector<32x4xf32>
    %cst_8 = arith.constant dense<0.000000e+00> : vector<32x256xf32>
    %12 = tpu.matmul %11, %8, %cst_8 {dimension_numbers = #tpu.dot_dimension_numbers<[1], [0], [0], [1], [0, 0, 1, 1], [], []>} : vector<32x4xf32>, vector<4x256xf32>, vector<32x256xf32> -> vector<32x256xf32>
    %c0_9 = arith.constant 0 : index
    %c0_10 = arith.constant 0 : index
    %13 = vector.load %arg3[%c0_9, %c0_10] : memref<32x1xf32, #tpu.memory_space<vmem>>, vector<32x1xf32>
    %14 = vector.broadcast %13 : vector<32x1xf32> to vector<32x256xf32>
    %15 = arith.addf %12, %14 : vector<32x256xf32>
    %cst_11 = arith.constant 0.000000e+00 : f32
    %16 = vector.broadcast %cst_11 : f32 to vector<32x256xf32>
    %17 = arith.cmpf oge, %15, %16 : vector<32x256xf32>
    %18 = vector.broadcast %9 : f32 to vector<32x256xf32>
    %19 = arith.mulf %18, %15 : vector<32x256xf32>
    %20 = arith.select %17, %15, %19 : vector<32x256xi1>, vector<32x256xf32>
    %c0_12 = arith.constant 0 : index
    %c0_13 = arith.constant 0 : index
    %21 = vector.load %arg5[%c0_12, %c0_13] : memref<32x32xf32, #tpu.memory_space<vmem>>, vector<32x32xf32>
    %cst_14 = arith.constant dense<0.000000e+00> : vector<32x256xf32>
    %22 = tpu.matmul %21, %20, %cst_14 {dimension_numbers = #tpu.dot_dimension_numbers<[1], [0], [0], [1], [0, 0, 1, 1], [], []>} : vector<32x32xf32>, vector<32x256xf32>, vector<32x256xf32> -> vector<32x256xf32>
    %c0_15 = arith.constant 0 : index
    %c0_16 = arith.constant 0 : index
    %23 = vector.load %arg6[%c0_15, %c0_16] : memref<32x1xf32, #tpu.memory_space<vmem>>, vector<32x1xf32>
    %24 = vector.broadcast %23 : vector<32x1xf32> to vector<32x256xf32>
    %25 = arith.addf %22, %24 : vector<32x256xf32>
    %cst_17 = arith.constant 0.000000e+00 : f32
    %26 = vector.broadcast %cst_17 : f32 to vector<32x256xf32>
    %27 = arith.cmpf oge, %25, %26 : vector<32x256xf32>
    %28 = vector.broadcast %10 : f32 to vector<32x256xf32>
    %29 = arith.mulf %28, %25 : vector<32x256xf32>
    %30 = arith.select %27, %25, %29 : vector<32x256xi1>, vector<32x256xf32>
    %c0_18 = arith.constant 0 : index
    %c0_19 = arith.constant 0 : index
    %31 = vector.load %arg8[%c0_18, %c0_19] : memref<2x32xf32, #tpu.memory_space<vmem>>, vector<2x32xf32>
    %cst_20 = arith.constant dense<0.000000e+00> : vector<2x256xf32>
    %32 = tpu.matmul %31, %30, %cst_20 {dimension_numbers = #tpu.dot_dimension_numbers<[1], [0], [0], [1], [0, 0, 1, 1], [], []>} : vector<2x32xf32>, vector<32x256xf32>, vector<2x256xf32> -> vector<2x256xf32>
    %c0_21 = arith.constant 0 : index
    %c0_22 = arith.constant 0 : index
    %33 = vector.load %arg9[%c0_21, %c0_22] : memref<2x1xf32, #tpu.memory_space<vmem>>, vector<2x1xf32>
    %34 = vector.broadcast %33 : vector<2x1xf32> to vector<2x256xf32>
    %35 = arith.addf %32, %34 : vector<2x256xf32>
    %c0_23 = arith.constant 0 : index
    %c0_24 = arith.constant 0 : index
    %36 = vector.load %arg10[%c0_23, %c0_24] : memref<2x256xf32, #tpu.memory_space<vmem>>, vector<2x256xf32>
    tpu.vector_store %arg10[%c0_23, %c0_24], %35 {strides = array<i32>} : memref<2x256xf32, #tpu.memory_space<vmem>>, vector<2x256xf32>,
    return
  }
  func.func @transform_0(%arg0: i32) -> (i32, i32) {
    %c0_i32 = arith.constant 0 : i32
    %c0_i32_0 = arith.constant 0 : i32
    return %c0_i32, %arg0 : i32, i32
  }
  func.func @transform_1(%arg0: i32) -> (i32, i32) {
    %c0_i32 = arith.constant 0 : i32
    %c0_i32_0 = arith.constant 0 : i32
    %c0_i32_1 = arith.constant 0 : i32
    return %c0_i32, %c0_i32_0 : i32, i32
  }
  func.func @transform_2(%arg0: i32) -> (i32, i32) {
    %c0_i32 = arith.constant 0 : i32
    %c0_i32_0 = arith.constant 0 : i32
    %c0_i32_1 = arith.constant 0 : i32
    return %c0_i32, %c0_i32_0 : i32, i32
  }
  func.func @transform_3(%arg0: i32) -> (i32, i32) {
    %c0_i32 = arith.constant 0 : i32
    %c0_i32_0 = arith.constant 0 : i32
    %c0_i32_1 = arith.constant 0 : i32
    return %c0_i32, %c0_i32_0 : i32, i32
  }
  func.func @transform_4(%arg0: i32) -> (i32, i32) {
    %c0_i32 = arith.constant 0 : i32
    %c0_i32_0 = arith.constant 0 : i32
    %c0_i32_1 = arith.constant 0 : i32
    return %c0_i32, %c0_i32_0 : i32, i32
  }
  func.func @transform_5(%arg0: i32) -> (i32, i32) {
    %c0_i32 = arith.constant 0 : i32
    %c0_i32_0 = arith.constant 0 : i32
    %c0_i32_1 = arith.constant 0 : i32
    return %c0_i32, %c0_i32_0 : i32, i32
  }
  func.func @transform_6(%arg0: i32) -> (i32, i32) {
    %c0_i32 = arith.constant 0 : i32
    %c0_i32_0 = arith.constant 0 : i32
    %c0_i32_1 = arith.constant 0 : i32
    return %c0_i32, %c0_i32_0 : i32, i32
  }
  func.func @transform_7(%arg0: i32) -> (i32, i32) {
    %c0_i32 = arith.constant 0 : i32
    %c0_i32_0 = arith.constant 0 : i32
    %c0_i32_1 = arith.constant 0 : i32
    return %c0_i32, %c0_i32_0 : i32, i32
  }
  func.func @transform_8(%arg0: i32) -> (i32, i32) {
    %c0_i32 = arith.constant 0 : i32
    %c0_i32_0 = arith.constant 0 : i32
    %c0_i32_1 = arith.constant 0 : i32
    return %c0_i32, %c0_i32_0 : i32, i32
  }
  func.func @transform_9(%arg0: i32) -> (i32, i32) {
    %c0_i32 = arith.constant 0 : i32
    %c0_i32_0 = arith.constant 0 : i32
    return %c0_i32, %arg0 : i32, i32
  }
}

</mosaic_0001>

<bundles_post_ra>
// kernel: tpu_custom_call.1
= control target key start
LH: loop header
LB: loop body
LE: loop exit
PB: predicated region body
PF: predicated region fallthrough
CT: control target
= control target key end

     0   :  { %s1132_s0 = inlined_call_operand.vmem [shape: f32[4,512], index: 0, kind: input, shape index: {}]   ;;  %s1133_s1 = inlined_call_operand.vmem [shape: f32[32,4], index: 1, kind: input, shape index: {}]   ;;  %s1134_s2 = inlined_call_operand.vmem [shape: f32[32,1], index: 2, kind: input, shape index: {}]   ;;  %s1135_s3 = inlined_call_operand.<no memory space> [shape: f32[1,1], index: 3, kind: input, shape index: {}]   ;;  %s1136_s4 = inlined_call_operand.vmem [shape: f32[32,32], index: 4, kind: input, shape index: {}]   ;;  %s1137_s5 = inlined_call_operand.vmem [shape: f32[32,1], index: 5, kind: input, shape index: {}]   ;;  %s1138_s6 = inlined_call_operand.<no memory space> [shape: f32[1,1], index: 6, kind: input, shape index: {}]   ;;  %s1139_s7 = inlined_call_operand.vmem [shape: f32[2,32], index: 7, kind: input, shape index: {}]   ;;  %s1140_s8 = inlined_call_operand.vmem [shape: f32[2,1], index: 8, kind: input, shape index: {}]   ;;  %s1141_s9 = inlined_call_operand.hbm [shape: f32[2,512], index: 9, kind: output, shape index: {}]  }
   0x1   :  { %14 = sst [smem:[#allocation2]] %s1135_s3 }
   0x2   :  { %15 = sst [smem:[#allocation3]] %s1138_s6 }
   0x3   :  { %16 = vsyncpa [#allocation5], 0 }
   0x4   :  { %18 = vsyncpa [#allocation5 + $0x1], 0  ;;  %s979_s13 = smov 0   ;;  %s981_s14 = smov 0  }
   0x5   :  { %s983_s15 = smov 0   ;;  %s985_s16 = smov 0  }
   0x6 LB: > { %s1000_s3 = sadd.s32 4294967295, %s920_s16   ;;  %s778_s6 = sadd.s32 4294967294, %s920_s16   ;;  %s920_s16 = sphi %s985_s16, %s1147_s16   ;;  %s916_s15 = sphi %s983_s15, %s1146_s15   ;;  %s912_s14 = sphi %s981_s14, %s1145_s14   ;;  %s908_s13 = sphi %s979_s13, %s1144_s13  }
   0x7   : > { %s1004_s17 = sadd.s32 1, %s920_s16   ;;  %s225_s18 = sadd.s32 1, %s916_s15 }
   0x8   : > { %s222_s19 = ssub.s32 %s920_s16, %s1004_s17  ;;  %p235_p0 = scmp.ne.s32.totalorder %s916_s15, %s912_s14 }
   0x9   : > { %p223_p1 = scmp.eq.s32.totalorder %s222_s19, 0  ;;  %p236_p2 = scmp.eq.s32.totalorder %s1000_s3, 1 }
   0xa   : > { %p241_p3 = scmp.ne.s32.totalorder %s912_s14, %s908_s13  ;;  %p242_p4 = scmp.eq.s32.totalorder %s778_s6, 1 }
   0xb   : > { %s1015_s20 = scalar_select %p223_p1, %s916_s15, %s225_s18  }
   0xc   : > { %p1017_p5 = por %p236_p2, %p235_p0  ;;  %p1021_p6 = por %p242_p4, %p241_p3 }
   0xd   : > { %p781_p7 = scmp.ge.s32.totalorder %s920_s16, 1  ;;  %p293_p8 = scmp.lt.s32.totalorder %s920_s16, 3 }
   0xf   : > { %p294_p9 = pnand %p781_p7, %p293_p8 }
  0x10   : > { %s783_s23 = sshll.u32 (!%p294_p9), %s1000_s3, 1  ;;  %s387_s6 = sld [smem:[#allocation2]] (!%p294_p9) }
  0x11   : > { %297 = sbr.rel (%p294_p9) target bundleno = 548 (0x224), region = 56  ;;  %p330_p10 = scmp.lt.s32.totalorder (!%p294_p9), %s783_s23, 3 }
  0x12   : > { %s388_s18 = sld [smem:[#allocation3]] (!%p294_p9)  ;;  %s810_s26 = sshll.u32 (!%p294_p9), %s1000_s3, 2 }
  0x13   : > { %s714_s29 = scalar_lea.hbm (!%p294_p9), %s1141_s9, %s810_s26 }
  0x14   : > { %s718_s11 = sshll.u32 (!%p294_p9), %s714_s29, 4  ;;  %s719_s11 = int_to_ptr.hbm [resolvable:$true] %s718_s11 }
  0x15   : > { %s872_s12 = sshra.s32 (!%p294_p9), %s719_s11, 4  ;;  %s873_s12 = int_to_ptr.hbm [resolvable:$true] %s872_s12 }
  0x16   : > { %s1149_s23 = smov (!%p330_p10, %s783_s23), 3  ;;  %vm344_vm0 = vcmask 1043456   ;;  %v394_v20 = vld [vmem:[%s1134_s2 + $0x8] sm:$0xff]  ;;  %v922_v21 = vmov 0   ;;  %v393_v27 = vld [vmem:[%s1134_s2] sm:$0xff]  ;;  %v396_v28 = vld [vmem:[%s1134_s2 + $0x18] sm:$0xff]  ;;  %p879_p0 = scmp.lt.s32.totalorder %s873_s12, %s1141_s9 }
  0x17   : > { %s784_s24 = sshll.u32 %s1149_s23, 2  ;;  %852 = vset.pattern.permute.xlu1 %v922_v21  ;;  %851 = vset.pattern.permute.xlu0 %v922_v21  ;;  %v395_v36 = vld [vmem:[%s1134_s2 + $0x10] sm:$0xff]  ;;  %v526_v42 = vld [vmem:[%s1137_s5 + $0x8] sm:$0xff]  ;;  %v525_v43 = vld [vmem:[%s1137_s5] sm:$0xff]  ;;  %vm421_vm7 = vcmask 31744   ;;  %s878_s23 = scalar_lea.hbm %s1141_s9, 8 }
  0x18   : > { %s333_s27 = scalar_lea.vmem %s1132_s0, %s784_s24  ;;  %404 = vperm.xlu1 %852, %v394_v20   ;;  %853 = vset.pattern.permute.xlu2 %v922_v21  ;;  %v389_v44 = vld [vmem:[%s1133_s1] sm:$0xff]  ;;  %v390_v47 = vld [vmem:[%s1133_s1 + $0x8] sm:$0xff]  ;;  %v391_v48 = vld [vmem:[%s1133_s1 + $0x10] sm:$0xff]  ;;  %s326_s24 = sand.u32 1, %s912_s14  }
  0x19   : > { %v336_v0 = vld [vmem:[%s333_s27] sm:$0xff]  ;;  %414 = vperm.xlu0 %851, %v396_v28   ;;  %v392_v49 = vld [vmem:[%s1133_s1 + $0x18] sm:$0xff]  ;;  %v523_v28 = vld [vmem:[%s1136_s4 + $0x10] sm:$0xff]  ;;  %s782_s25 = sshll.u32 %s326_s24, 2  ;;  %s703_s3 = scalar_lea.sflag [#allocation5], %s326_s24 }
  0x1a   : > { %v337_v1 = vmul.f32 %v336_v0, %v336_v0  ;;  %s328_s30 = scalar_lea.vmem [#allocation4], %s782_s25 }
  0x1b   : > { %s716_s10 = sshll.u32 %s328_s30, 4  ;;  %s717_s10 = int_to_ptr.vmem [resolvable:$true] %s716_s10 }
  0x1c   : > { %339 = vst [vmem:[#allocation1] ss:$2 sm:$0xff] %v337_v1 }
  0x20   : > { %399 = vperm.xlu1 %852, %v393_v27   ;;  %v646_v27 = vld [vmem:[%s1140_s8] sm:$0x3] }
  0x21   : > { %409 = vperm.xlu0 %851, %v395_v36  }
  0x23   : > { %v340_v2 = vld.sshfl [vmem:[#allocation1] sm:$0xff pattern:$0x75316420]  ;;  %v341_v3 = vld.sshfl [vmem:[#allocation1 + $0x8] sm:$0xff pattern:$0x75316420] }
  0x24   : > { %v345_v4 = vsel %vm344_vm0, %v340_v2, 0.0  ;;  %v352_v5 = vsel %vm344_vm0, %v341_v3, 0.0 }
  0x25   : > { %v346_v6 = vrot.slane %v345_v4, 4  ;;  %v353_v7 = vrot.slane %v352_v5, 4 }
  0x27   : > { %v347_v8 = vadd.f32 %v346_v6, %v345_v4  ;;  %v354_v9 = vadd.f32 %v353_v7, %v352_v5 }
  0x28   : > { %531 = vperm.xlu1 %852, %v525_v43   ;;  %v628_v43 = vstv %s388_s18 }
  0x29   : > { %v348_v10 = vrot.slane %v347_v8, 2  ;;  %v355_v11 = vrot.slane %v354_v9, 2  ;;  %536 = vperm.xlu0 %851, %v526_v42  }
  0x2b   : > { %v349_v12 = vadd.f32 %v348_v10, %v347_v8  ;;  %v356_v13 = vadd.f32 %v355_v11, %v354_v9 }
  0x2d   : > { %v350_v14 = vrot.slane %v349_v12, 1  ;;  %v357_v15 = vrot.slane %v356_v13, 1 }
  0x2f   : > { %v351_v16 = vadd.f32 %v350_v14, %v349_v12  ;;  %v358_v17 = vadd.f32 %v357_v15, %v356_v13  ;;  %v528_v15 = vld [vmem:[%s1137_s5 + $0x18] sm:$0xff] }
  0x30   : > { %546 = vperm.xlu2 %853, %v528_v15  }
  0x31   : > { %v359_v18 = vmax.f32 %v351_v16, 1e-24  ;;  %v360_v19 = vmax.f32 %v358_v17, 1e-24 }
  0x33   : > { %854 = vrsqrt.f32 %v359_v18  ;;  %vm367_vm1 = vweird.f32 %v359_v18  ;;  %vm377_vm3 = vweird.f32 %v360_v19 }
  0x34   : > { %856 = vrsqrt.f32 %v360_v19 }
  0x39   : > { %v855_v22 = vpop.eup %854 }
  0x3a   : > { %v857_v23 = vpop.eup %856  ;;  %v362_v24 = vmul.f32 %v855_v22, %v359_v18  ;;  %vm368_vm2 = vweird.f32 %v855_v22 }
  0x3b   : > { %v372_v25 = vmul.f32 %v857_v23, %v360_v19  ;;  %vm378_vm4 = vweird.f32 %v857_v23  ;;  %vm369_vm5 = vmor %vm367_vm1, %vm368_vm2 }
  0x3c   : > { %v363_v26 = vmul.f32 %v855_v22, %v362_v24  ;;  %vm379_vm6 = vmor %vm377_vm3, %vm378_vm4 }
  0x3d   : > { %v373_v29 = vmul.f32 %v857_v23, %v372_v25  ;;  %v527_v25 = vld [vmem:[%s1137_s5 + $0x10] sm:$0xff] }
  0x3e   : > { %v364_v30 = vmul.f32 0.5, %v363_v26  ;;  %541 = vperm.xlu2 %853, %v527_v25   ;;  %v522_v26 = vld [vmem:[%s1136_s4 + $0x8] sm:$0xff] }
  0x3f   : > { %v374_v31 = vmul.f32 0.5, %v373_v29  ;;  %v524_v29 = vld [vmem:[%s1136_s4 + $0x18] sm:$0xff] }
  0x40   : > { %v365_v32 = vsub.f32 1.5, %v364_v30 }
  0x41   : > { %v375_v33 = vsub.f32 1.5, %v374_v31 }
  0x42   : > { %v366_v34 = vmul.f32 %v855_v22, %v365_v32 }
  0x43   : > { %v376_v35 = vmul.f32 %v857_v23, %v375_v33 }
  0x44   : > { %v370_v37 = vsel %vm369_vm5, %v855_v22, %v366_v34  ;;  %v521_v22 = vld [vmem:[%s1136_s4] sm:$0xff] }
  0x45   : > { %v380_v38 = vsel %vm379_vm6, %v857_v23, %v376_v35 }
  0x46   : > { %v383_v39 = vrot.slane %v380_v38, 4  ;;  %649 = vperm.xlu2 %853, %v646_v27  }
  0x48   : > { %v384_v40 = vsel %vm344_vm0, %v370_v37, %v383_v39 }
  0x49   : > { %v386_v41 = vmul.f32 %v384_v40, %v336_v0  ;;  %v504_v0 = vstv %s387_s6  ;;  %s874_s6 = scalar_lea.hbm %s873_s12, 4 }
  0x4a   : > { %p875_p11 = scmp.ne.s32.totalorder %s873_s12, %s874_s6  ;;  %p880_p1 = scmp.lt.s32.totalorder %s878_s23, %s874_s6 }
  0x4b   : > { %418 = vst [vmem:[#allocation1] ss:$2 sm:$0xff] %v386_v41 }
  0x4c   : > { %p876_p12 = pnand %p875_p11, %p1017_p5  ;;  %p881_p2 = por %p880_p1, %p879_p0 }
  0x4e   : > { %p877_p13 = pneg %p876_p12 }
  0x50   : > { %p882_p3 = pnand %p881_p2, %p877_p13 }
  0x52   : > { %v419_v45 = vld.sshfl [vmem:[#allocation1] sm:$0xff pattern:$0x75316420]  ;;  %v420_v46 = vld.sshfl [vmem:[#allocation1 + $0x8] sm:$0xff pattern:$0x75316420] }
  0x53   : > { %785 = vmatpush.msk.msra.mxu0 %vm344_vm0, %v419_v45  ;;  %790 = vmatpush.msk.msra.mxu1 %vm344_vm0, %v420_v46  ;;  %vm549_vm0 = vcmask 261120  }
  0x54   : > { %786 = vmatmul.msk.f32.vlgmr.msra.gmra.mxu0 %vm421_vm7, %v389_v44  ;;  %791 = vmatmul.msk.f32.vlgmr.msra.gmra.mxu1 %vm421_vm7, %v389_v44 }
  0x5c   : > { %787 = vmatmul.msk.f32.gmra.mxu0 %vm421_vm7, %v390_v47  ;;  %792 = vmatmul.msk.f32.gmra.mxu1 %vm421_vm7, %v390_v47 }
  0x64   : > { %788 = vmatmul.msk.f32.gmra.mxu0 %vm421_vm7, %v391_v48  ;;  %793 = vmatmul.msk.f32.gmra.mxu1 %vm421_vm7, %v391_v48 }
  0x6c   : > { %789 = vmatmul.msk.f32.gmra.mxu0 %vm421_vm7, %v392_v49  ;;  %794 = vmatmul.msk.f32.gmra.mxu1 %vm421_vm7, %v392_v49 }
  0x8a   : > { %v405_v55 = vpop.permute.xlu1 %404  ;;  %v547_v34 = vpop.permute.xlu2 %546 }
  0x8b   : > { %v415_v54 = vpop.permute.xlu0 %414 }
  0x92   : > { %v400_v61 = vpop.permute.xlu1 %399 }
  0x93   : > { %v410_v58 = vpop.permute.xlu0 %409 }
  0x98   : > { %v542_v37 = vpop.permute.xlu2 %541 }
  0x9a   : > { %v532_v44 = vpop.permute.xlu1 %531 }
  0x9b   : > { %v537_v40 = vpop.permute.xlu0 %536 }
  0xd1   : > { %v455_v50 = vpop.f32.mrf.mxu0  ;;  %v484_v51 = vpop.f32.mrf.mxu1 }
  0xd2   : > { %v456_v5 = vadd.f32 %v455_v50, %v400_v61  ;;  %v485_v6 = vadd.f32 %v484_v51, %v400_v61 }
  0xd4   : > { %v505_v18 = vmul.f32 %v504_v0, %v456_v5  ;;  %v506_v19 = vmul.f32 %v504_v0, %v485_v6  ;;  %vm496_vm14 = vcmp.ge.f32.partialorder %v456_v5, 0.0  ;;  %vm497_vm15 = vcmp.ge.f32.partialorder %v485_v6, 0.0 }
  0xd6   : > { %v513_v23 = vsel %vm496_vm14, %v456_v5, %v505_v18  ;;  %v514_v24 = vsel %vm497_vm15, %v485_v6, %v506_v19 }
  0xd9   : > { %v458_v52 = vpop.f32.mrf.mxu0  ;;  %v487_v53 = vpop.f32.mrf.mxu1 }
  0xda   : > { %v459_v1 = vadd.f32 %v458_v52, %v405_v55  ;;  %v488_v2 = vadd.f32 %v487_v53, %v405_v55 }
  0xdc   : > { %v507_v13 = vmul.f32 %v504_v0, %v459_v1  ;;  %v508_v14 = vmul.f32 %v504_v0, %v488_v2  ;;  %vm498_vm12 = vcmp.ge.f32.partialorder %v459_v1, 0.0  ;;  %vm499_vm13 = vcmp.ge.f32.partialorder %v488_v2, 0.0 }
  0xde   : > { %v515_v20 = vsel %vm498_vm12, %v459_v1, %v507_v13  ;;  %v516_v21 = vsel %vm499_vm13, %v488_v2, %v508_v14  ;;  %v645_v1 = vld [vmem:[%s1139_s7] sm:$0x3] }
  0xe1   : > { %v461_v56 = vpop.f32.mrf.mxu0  ;;  %v490_v57 = vpop.f32.mrf.mxu1 }
  0xe2   : > { %v462_v59 = vadd.f32 %v461_v56, %v410_v58  ;;  %v491_v60 = vadd.f32 %v490_v57, %v410_v58 }
  0xe4   : > { %v509_v7 = vmul.f32 %v504_v0, %v462_v59  ;;  %v510_v8 = vmul.f32 %v504_v0, %v491_v60  ;;  %vm500_vm10 = vcmp.ge.f32.partialorder %v462_v59, 0.0  ;;  %vm501_vm11 = vcmp.ge.f32.partialorder %v491_v60, 0.0 }
  0xe6   : > { %v517_v16 = vsel %vm500_vm10, %v462_v59, %v509_v7  ;;  %v518_v17 = vsel %vm501_vm11, %v491_v60, %v510_v8 }
  0xe9   : > { %v464_v62 = vpop.f32.mrf.mxu0  ;;  %v493_v63 = vpop.f32.mrf.mxu1 }
  0xea   : > { %v465_v3 = vadd.f32 %v464_v62, %v415_v54  ;;  %v494_v4 = vadd.f32 %v493_v63, %v415_v54 }
  0xec   : > { %vm502_vm8 = vcmp.ge.f32.partialorder %v465_v3, 0.0  ;;  %v511_v9 = vmul.f32 %v504_v0, %v465_v3  ;;  %vm503_vm9 = vcmp.ge.f32.partialorder %v494_v4, 0.0  ;;  %v512_v10 = vmul.f32 %v504_v0, %v494_v4 }
  0xee   : > { %v519_v11 = vsel %vm502_vm8, %v465_v3, %v511_v9  ;;  %v520_v12 = vsel %vm503_vm9, %v494_v4, %v512_v10  ;;  %v650_v4 = vpop.permute.xlu2 %649  ;;  %vm698_vm9 = vcmask 1041408  }
  0xef   : > { %574 = vmatpush.msra.mxu2 %v519_v11  ;;  %603 = vmatpush.msra.mxu3 %v520_v12 }
  0xf1   : > { %575 = vmatpush.msra.mxu2 %v517_v16  ;;  %604 = vmatpush.msra.mxu3 %v518_v17 }
  0xf3   : > { %576 = vmatpush.msra.mxu2 %v515_v20  ;;  %605 = vmatpush.msra.mxu3 %v516_v21 }
  0xf5   : > { %577 = vmatpush.msra.mxu2 %v513_v23  ;;  %606 = vmatpush.msra.mxu3 %v514_v24 }
  0xf6   : > { %795 = vmatmul.msk.f32.vlgmr.msra.gmra.mxu2 %vm549_vm0, %v521_v22  ;;  %799 = vmatmul.msk.f32.vlgmr.msra.gmra.mxu3 %vm549_vm0, %v521_v22 }
  0xfe   : > { %796 = vmatmul.msk.f32.gmra.mxu2 %vm549_vm0, %v522_v26  ;;  %800 = vmatmul.msk.f32.gmra.mxu3 %vm549_vm0, %v522_v26 }
 0x106   : > { %797 = vmatmul.msk.f32.gmra.mxu2 %vm549_vm0, %v523_v28  ;;  %801 = vmatmul.msk.f32.gmra.mxu3 %vm549_vm0, %v523_v28 }
 0x10e   : > { %798 = vmatmul.msk.f32.gmra.mxu2 %vm549_vm0, %v524_v29  ;;  %802 = vmatmul.msk.f32.gmra.mxu3 %vm549_vm0, %v524_v29 }
 0x179   : > { %v579_v30 = vpop.f32.mrf.mxu2  ;;  %v608_v31 = vpop.f32.mrf.mxu3 }
 0x17a   : > { %v580_v49 = vadd.f32 %v579_v30, %v532_v44  ;;  %v609_v50 = vadd.f32 %v608_v31, %v532_v44 }
 0x17c   : > { %v629_v61 = vmul.f32 %v628_v43, %v580_v49  ;;  %v630_v62 = vmul.f32 %v628_v43, %v609_v50  ;;  %vm620_vm7 = vcmp.ge.f32.partialorder %v580_v49, 0.0  ;;  %vm621_vm8 = vcmp.ge.f32.partialorder %v609_v50, 0.0 }
 0x17e   : > { %v637_v2 = vsel %vm620_vm7, %v580_v49, %v629_v61  ;;  %v638_v3 = vsel %vm621_vm8, %v609_v50, %v630_v62 }
 0x181   : > { %v582_v32 = vpop.f32.mrf.mxu2  ;;  %v611_v33 = vpop.f32.mrf.mxu3 }
 0x182   : > { %v583_v45 = vadd.f32 %v582_v32, %v537_v40  ;;  %v612_v46 = vadd.f32 %v611_v33, %v537_v40 }
 0x184   : > { %v631_v57 = vmul.f32 %v628_v43, %v583_v45  ;;  %v632_v58 = vmul.f32 %v628_v43, %v612_v46  ;;  %vm622_vm5 = vcmp.ge.f32.partialorder %v583_v45, 0.0  ;;  %vm623_vm6 = vcmp.ge.f32.partialorder %v612_v46, 0.0 }
 0x186   : > { %v639_v63 = vsel %vm622_vm5, %v583_v45, %v631_v57  ;;  %v640_v0 = vsel %vm623_vm6, %v612_v46, %v632_v58 }
 0x189   : > { %v585_v35 = vpop.f32.mrf.mxu2  ;;  %v614_v36 = vpop.f32.mrf.mxu3 }
 0x18a   : > { %v586_v38 = vadd.f32 %v585_v35, %v542_v37  ;;  %v615_v39 = vadd.f32 %v614_v36, %v542_v37 }
 0x18c   : > { %v633_v51 = vmul.f32 %v628_v43, %v586_v38  ;;  %v634_v52 = vmul.f32 %v628_v43, %v615_v39  ;;  %vm624_vm3 = vcmp.ge.f32.partialorder %v586_v38, 0.0  ;;  %vm625_vm4 = vcmp.ge.f32.partialorder %v615_v39, 0.0 }
 0x18e   : > { %v641_v59 = vsel %vm624_vm3, %v586_v38, %v633_v51  ;;  %v642_v60 = vsel %vm625_vm4, %v615_v39, %v634_v52 }
 0x191   : > { %v588_v41 = vpop.f32.mrf.mxu2  ;;  %v617_v42 = vpop.f32.mrf.mxu3 }
 0x192   : > { %v589_v47 = vadd.f32 %v588_v41, %v547_v34  ;;  %v618_v48 = vadd.f32 %v617_v42, %v547_v34 }
 0x194   : > { %vm626_vm1 = vcmp.ge.f32.partialorder %v589_v47, 0.0  ;;  %v635_v53 = vmul.f32 %v628_v43, %v589_v47  ;;  %vm627_vm2 = vcmp.ge.f32.partialorder %v618_v48, 0.0  ;;  %v636_v54 = vmul.f32 %v628_v43, %v618_v48 }
 0x196   : > { %v643_v55 = vsel %vm626_vm1, %v589_v47, %v635_v53  ;;  %v644_v56 = vsel %vm627_vm2, %v618_v48, %v636_v54 }
 0x197   : > { %667 = vmatpush.msrb.mxu0 %v643_v55  ;;  %687 = vmatpush.msrb.mxu1 %v644_v56 }
 0x199   : > { %668 = vmatpush.msrb.mxu0 %v641_v59  ;;  %688 = vmatpush.msrb.mxu1 %v642_v60 }
 0x19b   : > { %669 = vmatpush.msrb.mxu0 %v639_v63  ;;  %689 = vmatpush.msrb.mxu1 %v640_v0 }
 0x19d   : > { %670 = vmatpush.msrb.mxu0 %v637_v2  ;;  %690 = vmatpush.msrb.mxu1 %v638_v3 }
 0x19e   : > { %803 = vmatmul.msk.f32.vlgmr.msrb.gmra.mxu0 %vm549_vm0, %v645_v1  ;;  %804 = vmatmul.msk.f32.vlgmr.msrb.gmra.mxu1 %vm549_vm0, %v645_v1 }
 0x21b   : > { %v672_v5 = vpop.f32.mrf.mxu0  ;;  %v692_v6 = vpop.f32.mrf.mxu1 }
 0x21c   : > { %v693_v7 = vadd.f32 %v692_v6, %v650_v4  ;;  %v673_v8 = vadd.f32 %v672_v5, %v650_v4 }
 0x21e   : > { %v697_v9 = vrot.slane %v693_v7, 6 }
 0x220   : > { %v699_v10 = vsel %vm698_vm9, %v673_v8, %v697_v9 }
 0x221   : > { %701 = vst [vmem:[%s328_s30] sm:$0xf] %v699_v10 }
 0x222   : > { %885 = shalt.err (!%p882_p3)
}
 0x223   : > { %811 = dma.vmem_to_hbm [thread:$0]  (%p1017_p5), %s717_s10, 64, %s719_s11, %s703_s3  }
 0x224 PF: > { %p817_p4 = scmp.ge.s32.totalorder %s920_s16, 2  ;;  %s730_s24 = sand.u32 1, %s908_s13  }
 0x225   : > { %s731_s27 = scalar_lea.sflag [#allocation5], %s730_s24 }
 0x226   : > { %p814_p7 = pnand %p817_p4, %p1021_p6 }
 0x228   : > { %p815_p8 = pneg %p814_p7 }
 0x22a   : > { %903 = dma.done.wait (%p815_p8), %s731_s27, 64  }
 0x22b   : > { %905 = vsyncadd (%p815_p8), %s731_s27, 4294967232  ;;  %p21_p9 = scmp.ge.s32.totalorder %s1004_s17, 4   ;;  %s1144_s13 = smov %s912_s14 }
 0x22c   : > { %s1145_s14 = smov %s916_s15  ;;  %s1146_s15 = smov %s1015_s20 }
 0x22d   : > { %s1147_s16 = smov %s1004_s17  ;;  %23 = sbr.rel (!%p21_p9) target bundleno = 6 (0x6), region = 91 }
 0x232   :  { %737 = vsyncpa [#allocation5], 1 }
 0x233   :  { %739 = vsyncpa [#allocation5 + $0x1], 1 }

</bundles_post_ra>
